<compile_context>
chip_gen: v7x
topology: tpu7x:2x2x1
jax: 0.10.0
libtpu: 0.0.40
codegen_flags: <defaults>
</compile_context>

<pallas_src>
import functools

import jax
import jax.numpy as jnp
from jax.experimental import pallas as pl
from jax.experimental.pallas import tpu as pltpu


_CP = 128                      # lane-dense (padded) class dimension
_ROW_TILES = (512, 256, 128)
_K_TILES = (2048, 1024, 512, 256, 128)
_VMEM_LIMIT_BYTES = 40 * 1024 * 1024   # < 64 MiB physical on v7x, > v5e default


# ---------------------------------------------------------------------------
# Fused Pallas kernel:
#   out[M, 128] = finalize( rowscale ⊙ (A[M, K] @ B[K, 128]) )
# A is streamed in (tm, tk) bf16 tiles; B (f32) is fully VMEM-resident and
# sliced / cast to bf16 in-kernel; f32 accumulator zeroed at k==0; at k==last
# the row scale is applied and (optionally) bias + masked log_softmax.
# ---------------------------------------------------------------------------
def _sgc_matmul_kernel(a_ref, b_ref, scale_ref, bias_ref, o_ref, acc_ref,
                       *, finalize_softmax, num_classes):
    k = pl.program_id(1)

    @pl.when(k == 0)
    def _():
        acc_ref[...] = jnp.zeros_like(acc_ref)

    tk = a_ref.shape[1]
    koff = pl.multiple_of(k * tk, tk)
    b_blk = b_ref[pl.ds(koff, tk), :].astype(jnp.bfloat16)
    acc_ref[...] += jnp.dot(a_ref[...], b_blk,
                            preferred_element_type=jnp.float32)

    @pl.when(k == pl.num_programs(1) - 1)
    def _():
        z = acc_ref[...] * scale_ref[...]            # (tm,128) * (tm,1)
        if finalize_softmax:
            logits = z + bias_ref[...]               # + (1,128) broadcast
            col = jax.lax.broadcasted_iota(jnp.int32, logits.shape, 1)
            valid = col < num_classes
            # f32 math throughout: -1e30 mask is safe, and v5e's VPU/EUP have
            # no bf16 path anyway.
            logits = jnp.where(valid, logits, jnp.float32(-1e30))
            m = jnp.max(logits, axis=-1, keepdims=True)
            zc = logits - m
            ssum = jnp.sum(jnp.where(valid, jnp.exp(zc), 0.0),
                           axis=-1, keepdims=True)
            z = zc - jnp.log(ssum)
        o_ref[...] = z.astype(o_ref.dtype)


def _sgc_matmul(a, b, scale, bias, *, tm, tk, finalize_softmax, num_classes):
    M, K = a.shape
    Kb, CP = b.shape
    assert Kb == K and CP == _CP and M % tm == 0 and K % tk == 0
    kernel = functools.partial(_sgc_matmul_kernel,
                               finalize_softmax=finalize_softmax,
                               num_classes=num_classes)
    bytes_accessed = (M * K * a.dtype.itemsize   # streamed A
                      + K * CP * 4               # resident B (fetched once)
                      + M * CP * 4               # output
                      + M * 4 + CP * 4)          # scale + bias
    return pl.pallas_call(
        kernel,
        out_shape=jax.ShapeDtypeStruct((M, CP), jnp.float32),
        grid_spec=pltpu.PrefetchScalarGridSpec(
            num_scalar_prefetch=0,
            grid=(M // tm, K // tk),                         # reduction last
            in_specs=[
                pl.BlockSpec((tm, tk), lambda i, k: (i, k)),  # A: streamed
                pl.BlockSpec((K, CP), lambda i, k: (0, 0)),   # B: VMEM-resident
                pl.BlockSpec((tm, 1), lambda i, k: (i, 0)),   # row scale
                pl.BlockSpec((1, CP), lambda i, k: (0, 0)),   # bias (last hop)
            ],
            out_specs=pl.BlockSpec((tm, CP), lambda i, k: (i, 0)),
            scratch_shapes=[pltpu.VMEM((tm, CP), jnp.float32)],
        ),
        compiler_params=pltpu.CompilerParams(
            dimension_semantics=("parallel", "arbitrary"),
            vmem_limit_bytes=_VMEM_LIMIT_BYTES,
        ),
        cost_estimate=pl.CostEstimate(
            flops=2 * M * K * CP,
            transcendentals=(2 * M * CP if finalize_softmax else 0),
            bytes_accessed=bytes_accessed,
        ),
    )(a, b, scale, bias)


# ---------------------------------------------------------------------------
# Plain-JAX glue + forward pass
# ---------------------------------------------------------------------------
def _round_up(x, m):
    return ((x + m - 1) // m) * m


def _largest_tile(n, candidates):
    for c in candidates:
        if n % c == 0:
            return c
    return candidates[-1]


def simple_gcn_forward(params, node_ids, edge_index, edge_weight, *, hops):
    # Embedding lookup (x = embedding(x).squeeze()); gather is XLA glue.
    feats = params["embedding"][node_ids.reshape(-1)]      # [N, F] f32
    N, F = feats.shape
    C = params["weight"].shape[1]

    pad_base = 128 if N <= 512 else 512
    Np = _round_up(max(N, 1), pad_base)
    Fp = _round_up(F, 128)
    tm = _largest_tile(Np, _ROW_TILES)
    tk_hop = _largest_tile(Np, _K_TILES)
    tk_proj = _largest_tile(Fp, _K_TILES)

    # --- graph normalization glue: E-sized ops + one scatter directly into the
    # padded bf16 A_hat (the D^-1/2 / D^-1 scaling is applied in-kernel). -----
    src, dst = edge_index[0], edge_index[1]
    w = edge_weight.astype(jnp.float32)
    is_self = src == dst
    # add_remaining_self_loops semantics: keep existing self-loop edges
    # (duplicates sum), fill 1.0 only for nodes without any self loop.
    has_loop = (jnp.zeros((N,), jnp.float32)
                .at[src].add(jnp.where(is_self, 1.0, 0.0))) > 0
    fill = jnp.where(has_loop, 0.0, 1.0)
    deg = jnp.zeros((N,), jnp.float32).at[dst].add(w) + fill
    dinv_sqrt = jnp.where(deg > 0, jax.lax.rsqrt(deg), 0.0)
    dinv = jnp.where(deg > 0, 1.0 / deg, 0.0)

    a_hat = jnp.zeros((Np, Np), jnp.bfloat16)
    a_hat = a_hat.at[dst, src].add(w.astype(jnp.bfloat16))
    diag = jnp.arange(N)
    a_hat = a_hat.at[diag, diag].add(fill.astype(jnp.bfloat16))

    dinv_sqrt_p = jnp.zeros((Np, 1), jnp.float32).at[:N, 0].set(dinv_sqrt)
    dinv_p = jnp.zeros((Np, 1), jnp.float32).at[:N, 0].set(dinv)

    x_p = (jnp.zeros((Np, Fp), jnp.bfloat16)
           .at[:N, :F].set(feats.astype(jnp.bfloat16)))
    w_p = jnp.zeros((Fp, _CP), jnp.float32).at[:F, :C].set(
        params["weight"].astype(jnp.float32))
    b_p = jnp.zeros((1, _CP), jnp.float32).at[0, :C].set(
        params["bias"].astype(jnp.float32))

    # Projection first (SGC is linear): Z0 = X @ W, with the first D^-1/2
    # fused into the finalize row-scale.
    proj_scale = dinv_sqrt_p if hops >= 1 else jnp.ones((Np, 1), jnp.float32)
    z = _sgc_matmul(x_p, w_p, proj_scale, b_p, tm=tm, tk=tk_proj,
                    finalize_softmax=(hops == 0), num_classes=C)

    # K propagation hops: Z <- rowscale ⊙ (A_hat @ Z); last hop fuses
    # bias + masked log_softmax into the matmul epilogue.
    # TODO(synk): for large sparse graphs, replace the dense A_hat stream with
    # a scalar-prefetch (CSR row pointers in SMEM) block-gather kernel.
    for h in range(hops):
        last = h == hops - 1
        z = _sgc_matmul(a_hat, z, dinv_sqrt_p if last else dinv_p, b_p,
                        tm=tm, tk=tk_hop,
                        finalize_softmax=last, num_classes=C)

    return z[:N, :C]


# ---------------------------------------------------------------------------
# Deterministic parameter init + example run
# ---------------------------------------------------------------------------
def init_params(key, vocab_size, feature_size, num_classes):
    k_emb, k_w = jax.random.split(key)
    embedding = jax.random.normal(k_emb, (vocab_size, feature_size), jnp.float32)
    limit = jnp.sqrt(6.0 / (feature_size + num_classes))
    weight = jax.random.uniform(
        k_w, (feature_size, num_classes), jnp.float32, -limit, limit)
    bias = jnp.zeros((num_classes,), jnp.float32)
    return {"embedding": embedding, "weight": weight, "bias": bias}


if __name__ == "__main__":
    VOCAB, FEAT, CLASSES, HOPS = 32, 32, 8, 2
    N_NODES, N_EDGES = 16, 48

    key = jax.random.PRNGKey(0)
    k_params, k_ids, k_ei, k_ew = jax.random.split(key, 4)

    params = init_params(k_params, VOCAB, FEAT, CLASSES)

    # data.x: [N, 1] vocab indices (squeezed inside forward)
    node_ids = jax.random.randint(k_ids, (N_NODES, 1), 0, VOCAB, dtype=jnp.int32)
    # data.edge_index: [2, E], data.edge_attr: [E]
    edge_index = jax.random.randint(k_ei, (2, N_EDGES), 0, N_NODES, dtype=jnp.int32)
    edge_weight = jax.random.uniform(k_ew, (N_EDGES,), jnp.float32, 0.1, 1.0)

    fwd = jax.jit(functools.partial(simple_gcn_forward, hops=HOPS))
    out = jax.block_until_ready(fwd(params, node_ids, edge_index, edge_weight))

    # Sanity: correct shape, finite, and each log_softmax row sums to ~1 in exp.
    assert out.shape == (N_NODES, CLASSES)
    assert bool(jnp.all(jnp.isfinite(out)))
    row_sums = jnp.exp(out).sum(axis=1)
    assert bool(jnp.all(jnp.abs(row_sums - 1.0) < 1e-4))

    print("KERNEL_OK")
</pallas_src>

<mosaic_0001>
module attributes {stable_mosaic.version = 11 : i64} {
  func.func private @main(%arg0: i32) attributes {dimension_semantics = [#tpu.dimension_semantics<core_parallel>], iteration_bounds = array<i64: 2>, tpu.core_type = #tpu.core_type<sc_scalar_subcore>, window_params = []} {
    return
  }
}

module attributes {stable_mosaic.version = 11 : i64} {
  func.func private @main(%arg0: i32) attributes {dimension_semantics = [#tpu.dimension_semantics<core_parallel>], iteration_bounds = array<i64: 2>, tpu.core_type = #tpu.core_type<sc_scalar_subcore>, window_params = []} {
    return
  }
}

module attributes {stable_mosaic.version = 11 : i64} {
  func.func @_sgc_matmul_kernel(%arg0: i32, %arg1: i32, %arg2: memref<128x128xbf16, #tpu.memory_space<vmem>>, %arg3: memref<128x128xf32, #tpu.memory_space<vmem>>, %arg4: memref<128x1xf32, #tpu.memory_space<vmem>>, %arg5: memref<1x128xf32, #tpu.memory_space<vmem>>, %arg6: memref<128x128xf32, #tpu.memory_space<vmem>>, %arg7: memref<128x128xf32, #tpu.memory_space<vmem>>) attributes {dimension_semantics = [#tpu.dimension_semantics<parallel>, #tpu.dimension_semantics<arbitrary>], iteration_bounds = array<i64: 1, 1>, scalar_prefetch = 0 : i64, scratch_operands = 1 : i64, tpu.core_type = #tpu.core_type<tc>, window_params = [{transform_indices = @transform_0, window_bounds = array<i64: 128, 128>}, {pipeline_mode = #tpu.pipeline_mode<synchronous>, transform_indices = @transform_1, window_bounds = array<i64: 128, 128>}, {transform_indices = @transform_2, window_bounds = array<i64: 128, 1>}, {pipeline_mode = #tpu.pipeline_mode<synchronous>, transform_indices = @transform_3, window_bounds = array<i64: 1, 128>}, {transform_indices = @transform_4, window_bounds = array<i64: 128, 128>}]} {
    %c0_i32 = arith.constant 0 : i32
    %0 = arith.cmpi eq, %arg1, %c0_i32 : i32
    %1 = arith.extui %0 : i1 to i32
    %c0_i32_0 = arith.constant 0 : i32
    %2 = arith.cmpi ne, %1, %c0_i32_0 : i32
    scf.if %2 {
      %cst_9 = arith.constant 0.000000e+00 : f32
      %16 = vector.broadcast %cst_9 : f32 to vector<128x128xf32>
      %c0_10 = arith.constant 0 : index
      %c0_11 = arith.constant 0 : index
      %17 = vector.load %arg7[%c0_10, %c0_11] : memref<128x128xf32, #tpu.memory_space<vmem>>, vector<128x128xf32>
      tpu.vector_store %arg7[%c0_10, %c0_11], %16 {strides = array<i32>} : memref<128x128xf32, #tpu.memory_space<vmem>>, vector<128x128xf32>,
    } else {
    }
    %c128_i32 = arith.constant 128 : i32
    %3 = arith.muli %arg1, %c128_i32 : i32
    %4 = tpu.assume_multiple %3, 128 : i32
    %5 = arith.index_cast %4 : i32 to index
    %c0 = arith.constant 0 : index
    %6 = vector.load %arg3[%5, %c0] : memref<128x128xf32, #tpu.memory_space<vmem>>, vector<128x128xf32>
    %7 = arith.truncf %6 : vector<128x128xf32> to vector<128x128xbf16>
    %c0_1 = arith.constant 0 : index
    %c0_2 = arith.constant 0 : index
    %8 = vector.load %arg7[%c0_1, %c0_2] : memref<128x128xf32, #tpu.memory_space<vmem>>, vector<128x128xf32>
    %c0_3 = arith.constant 0 : index
    %c0_4 = arith.constant 0 : index
    %9 = vector.load %arg2[%c0_3, %c0_4] : memref<128x128xbf16, #tpu.memory_space<vmem>>, vector<128x128xbf16>
    %cst = arith.constant dense<0.000000e+00> : vector<128x128xf32>
    %10 = tpu.matmul %9, %7, %cst {dimension_numbers = #tpu.dot_dimension_numbers<[1], [0], [0], [1], [0, 0, 1, 1], [], []>} : vector<128x128xbf16>, vector<128x128xbf16>, vector<128x128xf32> -> vector<128x128xf32>
    %11 = arith.addf %8, %10 : vector<128x128xf32>
    %c0_5 = arith.constant 0 : index
    %c0_6 = arith.constant 0 : index
    %12 = vector.load %arg7[%c0_5, %c0_6] : memref<128x128xf32, #tpu.memory_space<vmem>>, vector<128x128xf32>
    tpu.vector_store %arg7[%c0_5, %c0_6], %11 {strides = array<i32>} : memref<128x128xf32, #tpu.memory_space<vmem>>, vector<128x128xf32>,
    %c0_i32_7 = arith.constant 0 : i32
    %13 = arith.cmpi eq, %arg1, %c0_i32_7 : i32
    %14 = arith.extui %13 : i1 to i32
    %c0_i32_8 = arith.constant 0 : i32
    %15 = arith.cmpi ne, %14, %c0_i32_8 : i32
    scf.if %15 {
      %c0_9 = arith.constant 0 : index
      %c0_10 = arith.constant 0 : index
      %16 = vector.load %arg7[%c0_9, %c0_10] : memref<128x128xf32, #tpu.memory_space<vmem>>, vector<128x128xf32>
      %c0_11 = arith.constant 0 : index
      %c0_12 = arith.constant 0 : index
      %17 = vector.load %arg4[%c0_11, %c0_12] : memref<128x1xf32, #tpu.memory_space<vmem>>, vector<128x1xf32>
      %18 = vector.broadcast %17 : vector<128x1xf32> to vector<128x128xf32>
      %19 = arith.mulf %16, %18 : vector<128x128xf32>
      %c0_13 = arith.constant 0 : index
      %c0_14 = arith.constant 0 : index
      %20 = vector.load %arg6[%c0_13, %c0_14] : memref<128x128xf32, #tpu.memory_space<vmem>>, vector<128x128xf32>
      tpu.vector_store %arg6[%c0_13, %c0_14], %19 {strides = array<i32>} : memref<128x128xf32, #tpu.memory_space<vmem>>, vector<128x128xf32>,
    } else {
    }
    return
  }
  func.func @transform_0(%arg0: i32, %arg1: i32) -> (i32, i32) {
    %c0_i32 = arith.constant 0 : i32
    return %arg0, %arg1 : i32, i32
  }
  func.func @transform_1(%arg0: i32, %arg1: i32) -> (i32, i32) {
    %c0_i32 = arith.constant 0 : i32
    %c0_i32_0 = arith.constant 0 : i32
    %c0_i32_1 = arith.constant 0 : i32
    return %c0_i32, %c0_i32_0 : i32, i32
  }
  func.func @transform_2(%arg0: i32, %arg1: i32) -> (i32, i32) {
    %c0_i32 = arith.constant 0 : i32
    %c0_i32_0 = arith.constant 0 : i32
    return %arg0, %c0_i32 : i32, i32
  }
  func.func @transform_3(%arg0: i32, %arg1: i32) -> (i32, i32) {
    %c0_i32 = arith.constant 0 : i32
    %c0_i32_0 = arith.constant 0 : i32
    %c0_i32_1 = arith.constant 0 : i32
    return %c0_i32, %c0_i32_0 : i32, i32
  }
  func.func @transform_4(%arg0: i32, %arg1: i32) -> (i32, i32) {
    %c0_i32 = arith.constant 0 : i32
    %c0_i32_0 = arith.constant 0 : i32
    return %arg0, %c0_i32 : i32, i32
  }
}

module attributes {stable_mosaic.version = 11 : i64} {
  func.func @_sgc_matmul_kernel(%arg0: i32, %arg1: i32, %arg2: memref<128x128xbf16, #tpu.memory_space<vmem>>, %arg3: memref<128x128xf32, #tpu.memory_space<vmem>>, %arg4: memref<128x1xf32, #tpu.memory_space<vmem>>, %arg5: memref<1x128xf32, #tpu.memory_space<vmem>>, %arg6: memref<128x128xf32, #tpu.memory_space<vmem>>, %arg7: memref<128x128xf32, #tpu.memory_space<vmem>>) attributes {dimension_semantics = [#tpu.dimension_semantics<parallel>, #tpu.dimension_semantics<arbitrary>], iteration_bounds = array<i64: 1, 1>, scalar_prefetch = 0 : i64, scratch_operands = 1 : i64, tpu.core_type = #tpu.core_type<tc>, window_params = [{transform_indices = @transform_0, window_bounds = array<i64: 128, 128>}, {pipeline_mode = #tpu.pipeline_mode<synchronous>, transform_indices = @transform_1, window_bounds = array<i64: 128, 128>}, {transform_indices = @transform_2, window_bounds = array<i64: 128, 1>}, {pipeline_mode = #tpu.pipeline_mode<synchronous>, transform_indices = @transform_3, window_bounds = array<i64: 1, 128>}, {transform_indices = @transform_4, window_bounds = array<i64: 128, 128>}]} {
    %c0_i32 = arith.constant 0 : i32
    %0 = arith.cmpi eq, %arg1, %c0_i32 : i32
    %1 = arith.extui %0 : i1 to i32
    %c0_i32_0 = arith.constant 0 : i32
    %2 = arith.cmpi ne, %1, %c0_i32_0 : i32
    scf.if %2 {
      %cst_9 = arith.constant 0.000000e+00 : f32
      %16 = vector.broadcast %cst_9 : f32 to vector<128x128xf32>
      %c0_10 = arith.constant 0 : index
      %c0_11 = arith.constant 0 : index
      %17 = vector.load %arg7[%c0_10, %c0_11] : memref<128x128xf32, #tpu.memory_space<vmem>>, vector<128x128xf32>
      tpu.vector_store %arg7[%c0_10, %c0_11], %16 {strides = array<i32>} : memref<128x128xf32, #tpu.memory_space<vmem>>, vector<128x128xf32>,
    } else {
    }
    %c128_i32 = arith.constant 128 : i32
    %3 = arith.muli %arg1, %c128_i32 : i32
    %4 = tpu.assume_multiple %3, 128 : i32
    %5 = arith.index_cast %4 : i32 to index
    %c0 = arith.constant 0 : index
    %6 = vector.load %arg3[%5, %c0] : memref<128x128xf32, #tpu.memory_space<vmem>>, vector<128x128xf32>
    %7 = arith.truncf %6 : vector<128x128xf32> to vector<128x128xbf16>
    %c0_1 = arith.constant 0 : index
    %c0_2 = arith.constant 0 : index
    %8 = vector.load %arg7[%c0_1, %c0_2] : memref<128x128xf32, #tpu.memory_space<vmem>>, vector<128x128xf32>
    %c0_3 = arith.constant 0 : index
    %c0_4 = arith.constant 0 : index
    %9 = vector.load %arg2[%c0_3, %c0_4] : memref<128x128xbf16, #tpu.memory_space<vmem>>, vector<128x128xbf16>
    %cst = arith.constant dense<0.000000e+00> : vector<128x128xf32>
    %10 = tpu.matmul %9, %7, %cst {dimension_numbers = #tpu.dot_dimension_numbers<[1], [0], [0], [1], [0, 0, 1, 1], [], []>} : vector<128x128xbf16>, vector<128x128xbf16>, vector<128x128xf32> -> vector<128x128xf32>
    %11 = arith.addf %8, %10 : vector<128x128xf32>
    %c0_5 = arith.constant 0 : index
    %c0_6 = arith.constant 0 : index
    %12 = vector.load %arg7[%c0_5, %c0_6] : memref<128x128xf32, #tpu.memory_space<vmem>>, vector<128x128xf32>
    tpu.vector_store %arg7[%c0_5, %c0_6], %11 {strides = array<i32>} : memref<128x128xf32, #tpu.memory_space<vmem>>, vector<128x128xf32>,
    %c0_i32_7 = arith.constant 0 : i32
    %13 = arith.cmpi eq, %arg1, %c0_i32_7 : i32
    %14 = arith.extui %13 : i1 to i32
    %c0_i32_8 = arith.constant 0 : i32
    %15 = arith.cmpi ne, %14, %c0_i32_8 : i32
    scf.if %15 {
      %c0_9 = arith.constant 0 : index
      %c0_10 = arith.constant 0 : index
      %16 = vector.load %arg7[%c0_9, %c0_10] : memref<128x128xf32, #tpu.memory_space<vmem>>, vector<128x128xf32>
      %c0_11 = arith.constant 0 : index
      %c0_12 = arith.constant 0 : index
      %17 = vector.load %arg4[%c0_11, %c0_12] : memref<128x1xf32, #tpu.memory_space<vmem>>, vector<128x1xf32>
      %18 = vector.broadcast %17 : vector<128x1xf32> to vector<128x128xf32>
      %19 = arith.mulf %16, %18 : vector<128x128xf32>
      %c0_13 = arith.constant 0 : index
      %c0_14 = arith.constant 0 : index
      %20 = vector.load %arg5[%c0_13, %c0_14] : memref<1x128xf32, #tpu.memory_space<vmem>>, vector<1x128xf32>
      %21 = vector.broadcast %20 : vector<1x128xf32> to vector<128x128xf32>
      %22 = arith.addf %19, %21 : vector<128x128xf32>
      %23 = tpu.iota {dimensions = array<i32: 1>} : vector<128x128xi32>
      %c8_i32 = arith.constant 8 : i32
      %24 = vector.broadcast %c8_i32 : i32 to vector<128x128xi32>
      %25 = arith.cmpi slt, %23, %24 : vector<128x128xi32>
      %cst_15 = arith.constant -1.000000e+30 : f32
      %26 = vector.broadcast %cst_15 : f32 to vector<128x128xf32>
      %27 = arith.select %25, %22, %26 : vector<128x128xi1>, vector<128x128xf32>
      %cst_16 = arith.constant dense<0xFF800000> : vector<128xf32>
      %28 = vector.multi_reduction <maximumf>, %27, %cst_16 [1] : vector<128x128xf32> to vector<128xf32>
      %29 = vector.shape_cast %28 : vector<128xf32> to vector<128x1xf32>
      %30 = vector.broadcast %29 : vector<128x1xf32> to vector<128x128xf32>
      %31 = arith.subf %27, %30 : vector<128x128xf32>
      %32 = math.exp %31 : vector<128x128xf32>
      %cst_17 = arith.constant 0.000000e+00 : f32
      %33 = vector.broadcast %cst_17 : f32 to vector<128x128xf32>
      %34 = arith.select %25, %32, %33 : vector<128x128xi1>, vector<128x128xf32>
      %cst_18 = arith.constant dense<0.000000e+00> : vector<128xf32>
      %35 = vector.multi_reduction <add>, %34, %cst_18 [1] : vector<128x128xf32> to vector<128xf32>
      %36 = vector.shape_cast %35 : vector<128xf32> to vector<128x1xf32>
      %37 = math.log %36 : vector<128x1xf32>
      %38 = vector.broadcast %37 : vector<128x1xf32> to vector<128x128xf32>
      %39 = arith.subf %31, %38 : vector<128x128xf32>
      %c0_19 = arith.constant 0 : index
      %c0_20 = arith.constant 0 : index
      %40 = vector.load %arg6[%c0_19, %c0_20] : memref<128x128xf32, #tpu.memory_space<vmem>>, vector<128x128xf32>
      tpu.vector_store %arg6[%c0_19, %c0_20], %39 {strides = array<i32>} : memref<128x128xf32, #tpu.memory_space<vmem>>, vector<128x128xf32>,
    } else {
    }
    return
  }
  func.func @transform_0(%arg0: i32, %arg1: i32) -> (i32, i32) {
    %c0_i32 = arith.constant 0 : i32
    return %arg0, %arg1 : i32, i32
  }
  func.func @transform_1(%arg0: i32, %arg1: i32) -> (i32, i32) {
    %c0_i32 = arith.constant 0 : i32
    %c0_i32_0 = arith.constant 0 : i32
    %c0_i32_1 = arith.constant 0 : i32
    return %c0_i32, %c0_i32_0 : i32, i32
  }
  func.func @transform_2(%arg0: i32, %arg1: i32) -> (i32, i32) {
    %c0_i32 = arith.constant 0 : i32
    %c0_i32_0 = arith.constant 0 : i32
    return %arg0, %c0_i32 : i32, i32
  }
  func.func @transform_3(%arg0: i32, %arg1: i32) -> (i32, i32) {
    %c0_i32 = arith.constant 0 : i32
    %c0_i32_0 = arith.constant 0 : i32
    %c0_i32_1 = arith.constant 0 : i32
    return %c0_i32, %c0_i32_0 : i32, i32
  }
  func.func @transform_4(%arg0: i32, %arg1: i32) -> (i32, i32) {
    %c0_i32 = arith.constant 0 : i32
    %c0_i32_0 = arith.constant 0 : i32
    return %arg0, %c0_i32 : i32, i32
  }
}

</mosaic_0001>

<bundles_post_ra>
// kernel: simple_gcn_forward.3
= control target key start
LH: loop header
LB: loop body
LE: loop exit
PB: predicated region body
PF: predicated region fallthrough
CT: control target
= control target key end

     0   :  { %v507_v3 = vmov 0   ;;  %s701_s1 = inlined_call_operand.vmem [shape: f32[128,128], index: 1, kind: input, shape index: {}]   ;;  %s702_s3 = inlined_call_operand.vmem [shape: f32[1,128], index: 3, kind: input, shape index: {}]   ;;  %s703_s0 = inlined_call_operand.vmem [shape: bf16[128,128], index: 0, kind: input, shape index: {}]   ;;  %s704_s2 = inlined_call_operand.vmem [shape: f32[128,1], index: 2, kind: input, shape index: {}]   ;;  %s705_s4 = inlined_call_operand.vmem [shape: f32[128,128], index: 4, kind: output, shape index: {}]  }
   0x1   :  { %v40_v0 = vld [vmem:[%s701_s1] sm:$0xff]  ;;  %v41_v1 = vld [vmem:[%s701_s1 + $0x8] sm:$0xff]  ;;  %v42_v2 = vld [vmem:[%s701_s1 + $0x10] sm:$0xff]  ;;  %498 = vset.pattern.permute.xlu1 %v507_v3  ;;  %497 = vset.pattern.permute.xlu0 %v507_v3 }
   0x2   :  { %v56_v4 = vpack.c.bf16 %v41_v1, %v40_v0  ;;  %v43_v5 = vld [vmem:[%s701_s1 + $0x18] sm:$0xff]  ;;  %v44_v7 = vld [vmem:[%s701_s1 + $0x20] sm:$0xff]  ;;  %v45_v8 = vld [vmem:[%s701_s1 + $0x28] sm:$0xff] }
   0x3   :  { %v57_v6 = vpack.c.bf16 %v43_v5, %v42_v2  ;;  %v46_v9 = vld [vmem:[%s701_s1 + $0x30] sm:$0xff]  ;;  %v58_v10 = vpack.c.bf16 %v45_v8, %v44_v7  ;;  %v47_v11 = vld [vmem:[%s701_s1 + $0x38] sm:$0xff]  ;;  %v499_v12 = vld [vmem:[%s703_s0] sm:$0xff]  }
   0x4   :  { %448 = vmatprep.subr.bf16.mxu0 %v56_v4  ;;  %480 = vmatprep.subr.bf16.mxu1 %v56_v4  ;;  %v500_v13 = vld [vmem:[%s703_s0 + $0x20] sm:$0xff]   ;;  %v59_v14 = vpack.c.bf16 %v47_v11, %v46_v9  ;;  %v49_v16 = vld [vmem:[%s701_s1 + $0x48] sm:$0xff]  ;;  %v294_v18 = vld [vmem:[%s704_s2 + $0x10] sm:$0xff] }
   0x5   :  { %449 = vmatpush3.bf16.msra.mxu0 %v56_v4  ;;  %488 = vmatpush3.bf16.msra.mxu1 %v56_v4  ;;  %v48_v15 = vld [vmem:[%s701_s1 + $0x40] sm:$0xff]  ;;  %v50_v20 = vld [vmem:[%s701_s1 + $0x50] sm:$0xff]  ;;  %v51_v21 = vld [vmem:[%s701_s1 + $0x58] sm:$0xff] }
   0x6   :  { %450 = vmatprep.subr.bf16.mxu0 %v57_v6  ;;  %481 = vmatprep.subr.bf16.mxu1 %v57_v6  ;;  %v60_v17 = vpack.c.bf16 %v49_v16, %v48_v15  ;;  %v292_v19 = vld [vmem:[%s704_s2] sm:$0xff]  ;;  %v295_v22 = vld [vmem:[%s704_s2 + $0x18] sm:$0xff]  ;;  %v293_v23 = vld [vmem:[%s704_s2 + $0x8] sm:$0xff]  ;;  %v61_v24 = vpack.c.bf16 %v51_v21, %v50_v20 }
   0x7   :  { %464 = vmatprep.mubr.bf16.mxu0 %v499_v12  ;;  %472 = vmatprep.mubr.bf16.mxu1 %v500_v13  ;;  %v52_v25 = vld [vmem:[%s701_s1 + $0x60] sm:$0xff]  ;;  %v53_v26 = vld [vmem:[%s701_s1 + $0x68] sm:$0xff]  ;;  %v54_v30 = vld [vmem:[%s701_s1 + $0x70] sm:$0xff] }
   0x8   :  { %320 = vperm.xlu1 %498, %v294_v18   ;;  %310 = vperm.xlu0 %497, %v292_v19   ;;  %v297_v27 = vld [vmem:[%s704_s2 + $0x28] sm:$0xff]  ;;  %v296_v28 = vld [vmem:[%s704_s2 + $0x20] sm:$0xff]  ;;  %v62_v29 = vpack.c.bf16 %v53_v26, %v52_v25  ;;  %v55_v31 = vld [vmem:[%s701_s1 + $0x78] sm:$0xff] }
   0x9   :  { %451 = vmatpush3.bf16.msra.mxu0 %v57_v6  ;;  %489 = vmatpush3.bf16.msra.mxu1 %v57_v6  ;;  %v299_v32 = vld [vmem:[%s704_s2 + $0x38] sm:$0xff]  ;;  %v298_v33 = vld [vmem:[%s704_s2 + $0x30] sm:$0xff]  ;;  %v63_v34 = vpack.c.bf16 %v55_v31, %v54_v30  ;;  %v301_v35 = vld [vmem:[%s704_s2 + $0x48] sm:$0xff] }
   0xa   :  { %452 = vmatprep.subr.bf16.mxu0 %v58_v10  ;;  %482 = vmatprep.subr.bf16.mxu1 %v58_v10  ;;  %v300_v36 = vld [vmem:[%s704_s2 + $0x40] sm:$0xff]  ;;  %v501_v37 = vld [vmem:[%s703_s0 + $0x8] sm:$0xff]   ;;  %v303_v39 = vld [vmem:[%s704_s2 + $0x58] sm:$0xff] }
   0xb   :  { %v502_v38 = vld [vmem:[%s703_s0 + $0x28] sm:$0xff]   ;;  %v302_v40 = vld [vmem:[%s704_s2 + $0x50] sm:$0xff]  ;;  %v304_v44 = vld [vmem:[%s704_s2 + $0x60] sm:$0xff] }
   0xc   :  { %325 = vperm.xlu1 %498, %v295_v22   ;;  %315 = vperm.xlu0 %497, %v293_v23   ;;  %v503_v41 = vld [vmem:[%s703_s0 + $0x10] sm:$0xff]   ;;  %v305_v43 = vld [vmem:[%s704_s2 + $0x68] sm:$0xff]  ;;  %v505_v45 = vld [vmem:[%s703_s0 + $0x18] sm:$0xff]  }
   0xd   :  { %453 = vmatpush3.bf16.msra.mxu0 %v58_v10  ;;  %490 = vmatpush3.bf16.msra.mxu1 %v58_v10  ;;  %v504_v42 = vld [vmem:[%s703_s0 + $0x30] sm:$0xff]   ;;  %v506_v46 = vld [vmem:[%s703_s0 + $0x38] sm:$0xff]  }
   0xe   :  { %454 = vmatprep.subr.bf16.mxu0 %v59_v14  ;;  %483 = vmatprep.subr.bf16.mxu1 %v59_v14  ;;  %v307_v47 = vld [vmem:[%s704_s2 + $0x78] sm:$0xff]  ;;  %v306_v48 = vld [vmem:[%s704_s2 + $0x70] sm:$0xff] }
  0x10   :  { %335 = vperm.xlu1 %498, %v297_v27   ;;  %330 = vperm.xlu0 %497, %v296_v28  }
  0x11   :  { %455 = vmatpush3.bf16.msra.mxu0 %v59_v14  ;;  %491 = vmatpush3.bf16.msra.mxu1 %v59_v14 }
  0x12   :  { %456 = vmatprep.subr.bf16.mxu0 %v60_v17  ;;  %484 = vmatprep.subr.bf16.mxu1 %v60_v17 }
  0x14   :  { %345 = vperm.xlu1 %498, %v299_v32   ;;  %340 = vperm.xlu0 %497, %v298_v33  }
  0x15   :  { %457 = vmatpush3.bf16.msra.mxu0 %v60_v17  ;;  %492 = vmatpush3.bf16.msra.mxu1 %v60_v17 }
  0x16   :  { %458 = vmatprep.subr.bf16.mxu0 %v61_v24  ;;  %485 = vmatprep.subr.bf16.mxu1 %v61_v24 }
  0x18   :  { %355 = vperm.xlu1 %498, %v301_v35   ;;  %350 = vperm.xlu0 %497, %v300_v36  }
  0x19   :  { %459 = vmatpush3.bf16.msra.mxu0 %v61_v24  ;;  %493 = vmatpush3.bf16.msra.mxu1 %v61_v24 }
  0x1a   :  { %460 = vmatprep.subr.bf16.mxu0 %v62_v29  ;;  %486 = vmatprep.subr.bf16.mxu1 %v62_v29 }
  0x1c   :  { %365 = vperm.xlu1 %498, %v303_v39   ;;  %360 = vperm.xlu0 %497, %v302_v40  }
  0x1d   :  { %461 = vmatpush3.bf16.msra.mxu0 %v62_v29  ;;  %494 = vmatpush3.bf16.msra.mxu1 %v62_v29 }
  0x1e   :  { %462 = vmatprep.subr.bf16.mxu0 %v63_v34  ;;  %487 = vmatprep.subr.bf16.mxu1 %v63_v34 }
  0x20   :  { %375 = vperm.xlu1 %498, %v305_v43   ;;  %370 = vperm.xlu0 %497, %v304_v44  }
  0x21   :  { %463 = vmatpush3.bf16.msra.mxu0 %v63_v34  ;;  %495 = vmatpush3.bf16.msra.mxu1 %v63_v34 }
  0x24   :  { %465 = vmatmul.mubr.bf16.vlgmr.msra.gmra.mrb[0].mxu0 %v501_v37  ;;  %473 = vmatmul.mubr.bf16.vlgmr.msra.gmra.mrb[0].mxu1 %v502_v38 }
  0x25   :  { %468 = vmatprep.mubr.bf16.mxu0 %v503_v41  ;;  %476 = vmatprep.mubr.bf16.mxu1 %v504_v42 }
  0x26   :  { %385 = vperm.xlu1 %498, %v307_v47   ;;  %380 = vperm.xlu0 %497, %v306_v48  }
  0x2c   :  { %469 = vmatmul.mubr.bf16.gmra.mrb[4].mxu0 %v505_v45  ;;  %477 = vmatmul.mubr.bf16.gmra.mrb[4].mxu1 %v506_v46 }
  0x87   :  { %v321_v49 = vpop.permute.xlu1 %320  ;;  %v311_v50 = vpop.permute.xlu0 %310 }
  0x8b   :  { %v326_v51 = vpop.permute.xlu1 %325  ;;  %v316_v52 = vpop.permute.xlu0 %315 }
  0x8f   :  { %v336_v53 = vpop.permute.xlu1 %335  ;;  %v331_v54 = vpop.permute.xlu0 %330 }
  0x93   :  { %v346_v55 = vpop.permute.xlu1 %345  ;;  %v341_v56 = vpop.permute.xlu0 %340 }
  0x97   :  { %v356_v57 = vpop.permute.xlu1 %355  ;;  %v351_v58 = vpop.permute.xlu0 %350 }
  0x9b   :  { %v366_v59 = vpop.permute.xlu1 %365  ;;  %v361_v60 = vpop.permute.xlu0 %360 }
  0x9f   :  { %v376_v61 = vpop.permute.xlu1 %375  ;;  %v371_v62 = vpop.permute.xlu0 %370 }
  0xa5   :  { %v386_v15 = vpop.permute.xlu1 %385  ;;  %v381_v16 = vpop.permute.xlu0 %380 }
  0xf7   :  { %v466_v63 = vpop.f32.mrb[0].mxu0  ;;  %v474_v0 = vpop.f32.mrb[0].mxu1 }
  0xf8   :  { %v390_v1 = vmul.f32 %v466_v63, %v321_v49  ;;  %v398_v2 = vmul.f32 %v474_v0, %v361_v60  ;;  %v178_v3 = vpop.f32.mrb[1].mxu0  ;;  %v210_v4 = vpop.f32.mrb[1].mxu1 }
  0xf9   :  { %v388_v5 = vmul.f32 %v311_v50, %v178_v3  ;;  %v396_v6 = vmul.f32 %v351_v58, %v210_v4  ;;  %v467_v7 = vpop.f32.mrb[2].mxu0  ;;  %v475_v8 = vpop.f32.mrb[2].mxu1 }
  0xfa   :  { %406 = vst [vmem:[%s705_s4 + $0x10] sm:$0xff] %v390_v1  ;;  %414 = vst [vmem:[%s705_s4 + $0x50] sm:$0xff] %v398_v2  ;;  %v391_v9 = vmul.f32 %v467_v7, %v326_v51  ;;  %v399_v10 = vmul.f32 %v475_v8, %v366_v59  ;;  %v181_v11 = vpop.f32.mrb[3].mxu0  ;;  %v213_v12 = vpop.f32.mrb[3].mxu1 }
  0xfb   :  { %404 = vst [vmem:[%s705_s4] sm:$0xff] %v388_v5  ;;  %412 = vst [vmem:[%s705_s4 + $0x40] sm:$0xff] %v396_v6  ;;  %v389_v13 = vmul.f32 %v316_v52, %v181_v11  ;;  %v397_v14 = vmul.f32 %v356_v57, %v213_v12 }
  0xfc   :  { %407 = vst [vmem:[%s705_s4 + $0x18] sm:$0xff] %v391_v9  ;;  %415 = vst [vmem:[%s705_s4 + $0x58] sm:$0xff] %v399_v10 }
  0xfd   :  { %405 = vst [vmem:[%s705_s4 + $0x8] sm:$0xff] %v389_v13  ;;  %413 = vst [vmem:[%s705_s4 + $0x48] sm:$0xff] %v397_v14 }
  0xff   :  { %v470_v17 = vpop.f32.mrb[4].mxu0  ;;  %v478_v18 = vpop.f32.mrb[4].mxu1 }
 0x100   :  { %v394_v19 = vmul.f32 %v470_v17, %v341_v56  ;;  %v402_v20 = vmul.f32 %v478_v18, %v381_v16  ;;  %v194_v21 = vpop.f32.mrb[5].mxu0  ;;  %v226_v22 = vpop.f32.mrb[5].mxu1 }
 0x101   :  { %v392_v23 = vmul.f32 %v331_v54, %v194_v21  ;;  %v400_v24 = vmul.f32 %v371_v62, %v226_v22  ;;  %v471_v25 = vpop.f32.mrb[6].mxu0  ;;  %v479_v26 = vpop.f32.mrb[6].mxu1 }
 0x102   :  { %410 = vst [vmem:[%s705_s4 + $0x30] sm:$0xff] %v394_v19  ;;  %418 = vst [vmem:[%s705_s4 + $0x70] sm:$0xff] %v402_v20  ;;  %v395_v27 = vmul.f32 %v471_v25, %v346_v55  ;;  %v403_v28 = vmul.f32 %v479_v26, %v386_v15  ;;  %v197_v29 = vpop.f32.mrb[7].mxu0  ;;  %v229_v30 = vpop.f32.mrb[7].mxu1 }
 0x103   :  { %408 = vst [vmem:[%s705_s4 + $0x20] sm:$0xff] %v392_v23  ;;  %416 = vst [vmem:[%s705_s4 + $0x60] sm:$0xff] %v400_v24  ;;  %v393_v31 = vmul.f32 %v336_v53, %v197_v29  ;;  %v401_v32 = vmul.f32 %v376_v61, %v229_v30 }
 0x104   :  { %411 = vst [vmem:[%s705_s4 + $0x38] sm:$0xff] %v395_v27  ;;  %419 = vst [vmem:[%s705_s4 + $0x78] sm:$0xff] %v403_v28 }
 0x105   :  { %409 = vst [vmem:[%s705_s4 + $0x28] sm:$0xff] %v393_v31  ;;  %417 = vst [vmem:[%s705_s4 + $0x68] sm:$0xff] %v401_v32 }

// kernel: simple_gcn_forward.5
= control target key start
LH: loop header
LB: loop body
LE: loop exit
PB: predicated region body
PF: predicated region fallthrough
CT: control target
= control target key end

     0   :  { %v790_v3 = vmov 0   ;;  %v427_v58 = vlaneseq  ;;  %s1167_s1 = inlined_call_operand.vmem [shape: f32[128,128], index: 1, kind: input, shape index: {}]   ;;  %s1168_s0 = inlined_call_operand.vmem [shape: bf16[128,128], index: 0, kind: input, shape index: {}]   ;;  %s1169_s2 = inlined_call_operand.vmem [shape: f32[128,1], index: 2, kind: input, shape index: {}]   ;;  %s1170_s3 = inlined_call_operand.vmem [shape: f32[1,128], index: 3, kind: input, shape index: {}]   ;;  %s1171_s4 = inlined_call_operand.vmem [shape: f32[128,128], index: 4, kind: output, shape index: {}]  }
   0x1   :  { %v40_v0 = vld [vmem:[%s1167_s1] sm:$0xff]  ;;  %v41_v1 = vld [vmem:[%s1167_s1 + $0x8] sm:$0xff]  ;;  %v42_v2 = vld [vmem:[%s1167_s1 + $0x10] sm:$0xff]  ;;  %716 = vset.pattern.permute.xlu0 %v790_v3  ;;  %717 = vset.pattern.permute.xlu1 %v790_v3 }
   0x2   :  { %v56_v4 = vpack.c.bf16 %v41_v1, %v40_v0  ;;  %v43_v5 = vld [vmem:[%s1167_s1 + $0x18] sm:$0xff]  ;;  %v44_v7 = vld [vmem:[%s1167_s1 + $0x20] sm:$0xff]  ;;  %v45_v8 = vld [vmem:[%s1167_s1 + $0x28] sm:$0xff]  ;;  %v938_v59 = vand.u32 127, %v427_v58 }
   0x3   :  { %v57_v6 = vpack.c.bf16 %v43_v5, %v42_v2  ;;  %v46_v9 = vld [vmem:[%s1167_s1 + $0x30] sm:$0xff]  ;;  %v58_v10 = vpack.c.bf16 %v45_v8, %v44_v7  ;;  %v47_v11 = vld [vmem:[%s1167_s1 + $0x38] sm:$0xff]  ;;  %v718_v12 = vld [vmem:[%s1168_s0] sm:$0xff]  }
   0x4   :  { %667 = vmatprep.subr.bf16.mxu0 %v56_v4  ;;  %699 = vmatprep.subr.bf16.mxu1 %v56_v4  ;;  %v719_v13 = vld [vmem:[%s1168_s0 + $0x20] sm:$0xff]   ;;  %v59_v14 = vpack.c.bf16 %v47_v11, %v46_v9  ;;  %v49_v16 = vld [vmem:[%s1167_s1 + $0x48] sm:$0xff]  ;;  %v294_v19 = vld [vmem:[%s1169_s2 + $0x10] sm:$0xff]  ;;  %vm429_vm0 = vcmp.lt.s32.totalorder %v938_v59, 8 }
   0x5   :  { %668 = vmatpush3.bf16.msra.mxu0 %v56_v4  ;;  %707 = vmatpush3.bf16.msra.mxu1 %v56_v4  ;;  %v48_v15 = vld [vmem:[%s1167_s1 + $0x40] sm:$0xff]  ;;  %v50_v20 = vld [vmem:[%s1167_s1 + $0x50] sm:$0xff]  ;;  %v51_v21 = vld [vmem:[%s1167_s1 + $0x58] sm:$0xff] }
   0x6   :  { %669 = vmatprep.subr.bf16.mxu0 %v57_v6  ;;  %700 = vmatprep.subr.bf16.mxu1 %v57_v6  ;;  %v60_v17 = vpack.c.bf16 %v49_v16, %v48_v15  ;;  %v292_v18 = vld [vmem:[%s1169_s2] sm:$0xff]  ;;  %v293_v22 = vld [vmem:[%s1169_s2 + $0x8] sm:$0xff]  ;;  %v295_v23 = vld [vmem:[%s1169_s2 + $0x18] sm:$0xff]  ;;  %v61_v24 = vpack.c.bf16 %v51_v21, %v50_v20 }
   0x7   :  { %683 = vmatprep.mubr.bf16.mxu0 %v718_v12  ;;  %691 = vmatprep.mubr.bf16.mxu1 %v719_v13  ;;  %v52_v25 = vld [vmem:[%s1167_s1 + $0x60] sm:$0xff]  ;;  %v53_v26 = vld [vmem:[%s1167_s1 + $0x68] sm:$0xff]  ;;  %v54_v30 = vld [vmem:[%s1167_s1 + $0x70] sm:$0xff] }
   0x8   :  { %310 = vperm.xlu0 %716, %v292_v18   ;;  %320 = vperm.xlu1 %717, %v294_v19   ;;  %v296_v27 = vld [vmem:[%s1169_s2 + $0x20] sm:$0xff]  ;;  %v297_v28 = vld [vmem:[%s1169_s2 + $0x28] sm:$0xff]  ;;  %v62_v29 = vpack.c.bf16 %v53_v26, %v52_v25  ;;  %v55_v31 = vld [vmem:[%s1167_s1 + $0x78] sm:$0xff] }
   0x9   :  { %670 = vmatpush3.bf16.msra.mxu0 %v57_v6  ;;  %708 = vmatpush3.bf16.msra.mxu1 %v57_v6  ;;  %v298_v32 = vld [vmem:[%s1169_s2 + $0x30] sm:$0xff]  ;;  %v299_v33 = vld [vmem:[%s1169_s2 + $0x38] sm:$0xff]  ;;  %v63_v34 = vpack.c.bf16 %v55_v31, %v54_v30  ;;  %v300_v35 = vld [vmem:[%s1169_s2 + $0x40] sm:$0xff] }
   0xa   :  { %671 = vmatprep.subr.bf16.mxu0 %v58_v10  ;;  %701 = vmatprep.subr.bf16.mxu1 %v58_v10  ;;  %v301_v36 = vld [vmem:[%s1169_s2 + $0x48] sm:$0xff]  ;;  %v302_v39 = vld [vmem:[%s1169_s2 + $0x50] sm:$0xff]  ;;  %v303_v40 = vld [vmem:[%s1169_s2 + $0x58] sm:$0xff] }
   0xb   :  { %v720_v37 = vld [vmem:[%s1168_s0 + $0x8] sm:$0xff]   ;;  %v722_v41 = vld [vmem:[%s1168_s0 + $0x10] sm:$0xff]   ;;  %v304_v43 = vld [vmem:[%s1169_s2 + $0x60] sm:$0xff] }
   0xc   :  { %315 = vperm.xlu0 %716, %v293_v22   ;;  %325 = vperm.xlu1 %717, %v295_v23   ;;  %v721_v38 = vld [vmem:[%s1168_s0 + $0x28] sm:$0xff]   ;;  %v723_v42 = vld [vmem:[%s1168_s0 + $0x30] sm:$0xff]   ;;  %v724_v45 = vld [vmem:[%s1168_s0 + $0x18] sm:$0xff]  }
   0xd   :  { %672 = vmatpush3.bf16.msra.mxu0 %v58_v10  ;;  %709 = vmatpush3.bf16.msra.mxu1 %v58_v10  ;;  %v305_v44 = vld [vmem:[%s1169_s2 + $0x68] sm:$0xff]  ;;  %v725_v46 = vld [vmem:[%s1168_s0 + $0x38] sm:$0xff]   ;;  %v306_v47 = vld [vmem:[%s1169_s2 + $0x70] sm:$0xff] }
   0xe   :  { %673 = vmatprep.subr.bf16.mxu0 %v59_v14  ;;  %702 = vmatprep.subr.bf16.mxu1 %v59_v14  ;;  %v307_v48 = vld [vmem:[%s1169_s2 + $0x78] sm:$0xff]  ;;  %v943_v0 = vld [vmem:[%s1170_s3] ss:$0 sm:$0xff] }
  0x10   :  { %330 = vperm.xlu0 %716, %v296_v27   ;;  %335 = vperm.xlu1 %717, %v297_v28  }
  0x11   :  { %674 = vmatpush3.bf16.msra.mxu0 %v59_v14  ;;  %710 = vmatpush3.bf16.msra.mxu1 %v59_v14 }
  0x12   :  { %675 = vmatprep.subr.bf16.mxu0 %v60_v17  ;;  %703 = vmatprep.subr.bf16.mxu1 %v60_v17 }
  0x14   :  { %340 = vperm.xlu0 %716, %v298_v32   ;;  %345 = vperm.xlu1 %717, %v299_v33  }
  0x15   :  { %676 = vmatpush3.bf16.msra.mxu0 %v60_v17  ;;  %711 = vmatpush3.bf16.msra.mxu1 %v60_v17 }
  0x16   :  { %677 = vmatprep.subr.bf16.mxu0 %v61_v24  ;;  %704 = vmatprep.subr.bf16.mxu1 %v61_v24 }
  0x18   :  { %350 = vperm.xlu0 %716, %v300_v35   ;;  %355 = vperm.xlu1 %717, %v301_v36  }
  0x19   :  { %678 = vmatpush3.bf16.msra.mxu0 %v61_v24  ;;  %712 = vmatpush3.bf16.msra.mxu1 %v61_v24 }
  0x1a   :  { %679 = vmatprep.subr.bf16.mxu0 %v62_v29  ;;  %705 = vmatprep.subr.bf16.mxu1 %v62_v29 }
  0x1c   :  { %360 = vperm.xlu0 %716, %v302_v39   ;;  %365 = vperm.xlu1 %717, %v303_v40  }
  0x1d   :  { %680 = vmatpush3.bf16.msra.mxu0 %v62_v29  ;;  %713 = vmatpush3.bf16.msra.mxu1 %v62_v29 }
  0x1e   :  { %681 = vmatprep.subr.bf16.mxu0 %v63_v34  ;;  %706 = vmatprep.subr.bf16.mxu1 %v63_v34 }
  0x20   :  { %370 = vperm.xlu0 %716, %v304_v43   ;;  %375 = vperm.xlu1 %717, %v305_v44  }
  0x21   :  { %682 = vmatpush3.bf16.msra.mxu0 %v63_v34  ;;  %714 = vmatpush3.bf16.msra.mxu1 %v63_v34 }
  0x24   :  { %684 = vmatmul.mubr.bf16.vlgmr.msra.gmra.mrb[0].mxu0 %v720_v37  ;;  %692 = vmatmul.mubr.bf16.vlgmr.msra.gmra.mrb[0].mxu1 %v721_v38 }
  0x25   :  { %687 = vmatprep.mubr.bf16.mxu0 %v722_v41  ;;  %695 = vmatprep.mubr.bf16.mxu1 %v723_v42 }
  0x26   :  { %380 = vperm.xlu0 %716, %v306_v47   ;;  %385 = vperm.xlu1 %717, %v307_v48  }
  0x2c   :  { %688 = vmatmul.mubr.bf16.gmra.mrb[4].mxu0 %v724_v45  ;;  %696 = vmatmul.mubr.bf16.gmra.mrb[4].mxu1 %v725_v46 }
  0x87   :  { %v311_v49 = vpop.permute.xlu0 %310  ;;  %v321_v50 = vpop.permute.xlu1 %320 }
  0x8b   :  { %v316_v51 = vpop.permute.xlu0 %315  ;;  %v326_v52 = vpop.permute.xlu1 %325 }
  0x8f   :  { %v331_v53 = vpop.permute.xlu0 %330  ;;  %v936_v54 = vpop.permute.xlu1 %335 }
  0x93   :  { %v341_v55 = vpop.permute.xlu0 %340  ;;  %v346_v56 = vpop.permute.xlu1 %345 }
  0x97   :  { %v351_v57 = vpop.permute.xlu0 %350  ;;  %v356_v60 = vpop.permute.xlu1 %355 }
  0x9b   :  { %v361_v61 = vpop.permute.xlu0 %360  ;;  %v366_v19 = vpop.permute.xlu1 %365 }
  0x9f   :  { %v371_v36 = vpop.permute.xlu0 %370 }
  0xa5   :  { %v381_v47 = vpop.permute.xlu0 %380 }
  0xf7   :  { %v685_v62 = vpop.f32.mrb[0].mxu0  ;;  %v693_v63 = vpop.f32.mrb[0].mxu1 }
  0xf8   :  { %v390_v1 = vmul.f32 %v685_v62, %v321_v50  ;;  %v398_v2 = vmul.f32 %v693_v63, %v361_v61  ;;  %v178_v3 = vpop.f32.mrb[1].mxu0  ;;  %v210_v4 = vpop.f32.mrb[1].mxu1 }
  0xf9   :  { %v388_v5 = vmul.f32 %v311_v49, %v178_v3  ;;  %v396_v6 = vmul.f32 %v351_v57, %v210_v4  ;;  %v686_v7 = vpop.f32.mrb[2].mxu0  ;;  %v694_v8 = vpop.f32.mrb[2].mxu1 }
  0xfa   :  { %v181_v9 = vpop.f32.mrb[3].mxu0  ;;  %v213_v10 = vpop.f32.mrb[3].mxu1  ;;  %v421_v11 = vadd.f32 %v943_v0, %v398_v2  ;;  %v413_v12 = vadd.f32 %v943_v0, %v390_v1  ;;  %v391_v13 = vmul.f32 %v686_v7, %v326_v52  ;;  %v399_v20 = vmul.f32 %v694_v8, %v366_v19 }
  0xfb   :  { %v389_v14 = vmul.f32 %v316_v51, %v181_v9  ;;  %v419_v17 = vadd.f32 %v943_v0, %v396_v6  ;;  %v411_v18 = vadd.f32 %v943_v0, %v388_v5  ;;  %v397_v34 = vmul.f32 %v356_v60, %v213_v10 }
  0xfc   :  { %v950_v15 = vsel %vm429_vm0, %v421_v11, -1e+30  ;;  %v954_v16 = vsel %vm429_vm0, %v413_v12, -1e+30  ;;  %v414_v23 = vadd.f32 %v943_v0, %v391_v13  ;;  %v422_v35 = vadd.f32 %v943_v0, %v399_v20 }
  0xfd   :  { %466 = vmax.xlane.f32.xlu1 %v950_v15  ;;  %450 = vmax.xlane.f32.xlu0 %v954_v16  ;;  %v963_v27 = vsel %vm429_vm0, %v419_v17, -1e+30  ;;  %v430_v28 = vsel %vm429_vm0, %v411_v18, -1e+30  ;;  %v412_v29 = vadd.f32 %v943_v0, %v389_v14  ;;  %v420_v42 = vadd.f32 %v943_v0, %v397_v34 }
  0xfe   :  { %v433_v38 = vsel %vm429_vm0, %v414_v23, -1e+30  ;;  %v441_v41 = vsel %vm429_vm0, %v422_v35, -1e+30 }
  0xff   :  { %v689_v21 = vpop.f32.mrb[4].mxu0  ;;  %v697_v22 = vpop.f32.mrb[4].mxu1  ;;  %v431_v39 = vsel %vm429_vm0, %v412_v29, -1e+30  ;;  %v439_v49 = vsel %vm429_vm0, %v420_v42, -1e+30 }
 0x100   :  { %v394_v24 = vmul.f32 %v689_v21, %v341_v55  ;;  %v194_v25 = vpop.f32.mrb[5].mxu0  ;;  %v226_v26 = vpop.f32.mrb[5].mxu1  ;;  %v402_v48 = vmul.f32 %v697_v22, %v381_v47 }
 0x101   :  { %462 = vmax.xlane.f32.xlu1 %v963_v27  ;;  %v698_v30 = vpop.f32.mrb[6].mxu1  ;;  %446 = vmax.xlane.f32.xlu0 %v430_v28  ;;  %v690_v31 = vpop.f32.mrb[6].mxu0  ;;  %v392_v37 = vmul.f32 %v331_v53, %v194_v25  ;;  %v400_v43 = vmul.f32 %v371_v36, %v226_v26 }
 0x102   :  { %v197_v32 = vpop.f32.mrb[7].mxu0  ;;  %v229_v33 = vpop.f32.mrb[7].mxu1  ;;  %v417_v40 = vadd.f32 %v943_v0, %v394_v24  ;;  %v395_v44 = vmul.f32 %v690_v31, %v346_v56  ;;  %v425_v56 = vadd.f32 %v943_v0, %v402_v48 }
 0x103   :  { %v415_v46 = vadd.f32 %v943_v0, %v392_v37  ;;  %v393_v50 = vmul.f32 %v936_v54, %v197_v32  ;;  %v423_v52 = vadd.f32 %v943_v0, %v400_v43  ;;  %v376_v55 = vpop.permute.xlu1 %375 }
 0x104   :  { %v436_v45 = vsel %vm429_vm0, %v417_v40, -1e+30  ;;  %v418_v53 = vadd.f32 %v943_v0, %v395_v44  ;;  %v401_v57 = vmul.f32 %v376_v55, %v229_v33  ;;  %v996_v63 = vsel %vm429_vm0, %v425_v56, -1e+30 }
 0x105   :  { %452 = vmax.xlane.f32.xlu0 %v433_v38  ;;  %448 = vmax.xlane.f32.xlu1 %v431_v39  ;;  %v434_v51 = vsel %vm429_vm0, %v415_v46, -1e+30  ;;  %v442_v58 = vsel %vm429_vm0, %v423_v52, -1e+30  ;;  %v416_v54 = vadd.f32 %v943_v0, %v393_v50 }
 0x106   :  { %v437_v60 = vsel %vm429_vm0, %v418_v53, -1e+30  ;;  %v424_v2 = vadd.f32 %v943_v0, %v401_v57 }
 0x107   :  { %v386_v61 = vpop.permute.xlu1 %385  ;;  %v1000_v1 = vsel %vm429_vm0, %v416_v54, -1e+30 }
 0x108   :  { %v403_v62 = vmul.f32 %v698_v30, %v386_v61  ;;  %v1007_v3 = vsel %vm429_vm0, %v424_v2, -1e+30 }
 0x109   :  { %468 = vmax.xlane.f32.xlu0 %v441_v41  ;;  %458 = vmax.xlane.f32.xlu1 %v436_v45 }
 0x10a   :  { %v426_v4 = vadd.f32 %v943_v0, %v403_v62 }
 0x10c   :  { %v1013_v5 = vsel %vm429_vm0, %v426_v4, -1e+30 }
 0x10d   :  { %464 = vmax.xlane.f32.xlu0 %v439_v49  ;;  %454 = vmax.xlane.f32.xlu1 %v434_v51 }
 0x111   :  { %470 = vmax.xlane.f32.xlu1 %v442_v58  ;;  %460 = vmax.xlane.f32.xlu0 %v437_v60 }
 0x115   :  { %474 = vmax.xlane.f32.xlu1 %v996_v63  ;;  %456 = vmax.xlane.f32.xlu0 %v1000_v1 }
 0x119   :  { %472 = vmax.xlane.f32.xlu0 %v1007_v3 }
 0x11d   :  { %476 = vmax.xlane.f32.xlu0 %v1013_v5 }
 0x18a   :  { %v467_v6 = vpop.xlane.xlu1 %466  ;;  %v451_v7 = vpop.xlane.xlu0 %450 }
 0x18b   :  { %v1017_v8 = vsub.f32 %v950_v15, %v467_v6  ;;  %v1020_v9 = vsub.f32 %v954_v16, %v451_v7 }
 0x18d   :  { %v498_v10 = vmul.f32 1.442695, %v1020_v9  ;;  %v514_v0 = vmul.f32 1.442695, %v1017_v8 }
 0x18e   :  { %v463_v11 = vpop.xlane.xlu1 %462  ;;  %v447_v12 = vpop.xlane.xlu0 %446 }
 0x18f   :  { %v1024_v13 = vsub.f32 %v430_v28, %v447_v12  ;;  %726 = vpow2.f32 %v498_v10  ;;  %v1027_v14 = vsub.f32 %v963_v27, %v463_v11 }
 0x190   :  { %728 = vpow2.f32 %v514_v0 }
 0x191   :  { %v494_v17 = vmul.f32 1.442695, %v1024_v13  ;;  %v510_v21 = vmul.f32 1.442695, %v1027_v14 }
 0x192   :  { %v453_v15 = vpop.xlane.xlu0 %452  ;;  %v449_v18 = vpop.xlane.xlu1 %448 }
 0x193   :  { %v1030_v19 = vsub.f32 %v433_v38, %v453_v15  ;;  %v1033_v20 = vsub.f32 %v431_v39, %v449_v18  ;;  %730 = vpow2.f32 %v494_v17 }
 0x195   :  { %v500_v16 = vmul.f32 1.442695, %v1030_v19  ;;  %v496_v26 = vmul.f32 1.442695, %v1033_v20 }
 0x196   :  { %v469_v22 = vpop.xlane.xlu0 %468  ;;  %v459_v23 = vpop.xlane.xlu1 %458 }
 0x197   :  { %732 = vpow2.f32 %v500_v16  ;;  %v1036_v24 = vsub.f32 %v441_v41, %v469_v22  ;;  %v1038_v25 = vsub.f32 %v436_v45, %v459_v23 }
 0x198   :  { %734 = vpow2.f32 %v510_v21 }
 0x199   :  { %v516_v27 = vmul.f32 1.442695, %v1036_v24  ;;  %v727_v28 = vpop.eup %726  ;;  %v506_v29 = vmul.f32 1.442695, %v1038_v25 }
 0x19a   :  { %v465_v30 = vpop.xlane.xlu0 %464  ;;  %v455_v31 = vpop.xlane.xlu1 %454  ;;  %v528_v34 = vsel %vm429_vm0, %v727_v28, 0.0 }
 0x19b   :  { %736 = vpow2.f32 %v516_v27  ;;  %v1043_v32 = vsub.f32 %v439_v49, %v465_v30  ;;  %v1045_v33 = vsub.f32 %v434_v51, %v455_v31  ;;  %v729_v35 = vpop.eup %728  ;;  %546 = vadd.xlane.f32.xlu1 %v528_v34 }
 0x19c   :  { %738 = vpow2.f32 %v496_v26  ;;  %v536_v42 = vsel %vm429_vm0, %v729_v35, 0.0 }
 0x19d   :  { %v512_v36 = vmul.f32 1.442695, %v1043_v32  ;;  %740 = vpow2.f32 %v506_v29  ;;  %v502_v37 = vmul.f32 1.442695, %v1045_v33  ;;  %v731_v43 = vpop.eup %730 }
 0x19e   :  { %v471_v38 = vpop.xlane.xlu1 %470  ;;  %v461_v39 = vpop.xlane.xlu0 %460  ;;  %v526_v52 = vsel %vm429_vm0, %v731_v43, 0.0 }
 0x19f   :  { %v1051_v40 = vsub.f32 %v442_v58, %v471_v38  ;;  %v1053_v41 = vsub.f32 %v437_v60, %v461_v39  ;;  %562 = vadd.xlane.f32.xlu1 %v536_v42  ;;  %742 = vpow2.f32 %v512_v36 }
 0x1a0   :  { %744 = vpow2.f32 %v502_v37 }
 0x1a1   :  { %v733_v44 = vpop.eup %732  ;;  %v508_v45 = vmul.f32 1.442695, %v1053_v41  ;;  %v518_v46 = vmul.f32 1.442695, %v1051_v40 }
 0x1a2   :  { %v475_v47 = vpop.xlane.xlu1 %474  ;;  %v457_v48 = vpop.xlane.xlu0 %456  ;;  %v529_v49 = vsel %vm429_vm0, %v733_v44, 0.0 }
 0x1a3   :  { %v1062_v50 = vsub.f32 %v996_v63, %v475_v47  ;;  %v1065_v51 = vsub.f32 %v1000_v1, %v457_v48  ;;  %548 = vadd.xlane.f32.xlu0 %v529_v49  ;;  %v735_v53 = vpop.eup %734  ;;  %542 = vadd.xlane.f32.xlu1 %v526_v52  ;;  %746 = vpow2.f32 %v508_v45 }
 0x1a4   :  { %748 = vpow2.f32 %v518_v46  ;;  %v534_v62 = vsel %vm429_vm0, %v735_v53, 0.0 }
 0x1a5   :  { %v737_v55 = vpop.eup %736  ;;  %v504_v56 = vmul.f32 1.442695, %v1065_v51  ;;  %v522_v57 = vmul.f32 1.442695, %v1062_v50 }
 0x1a6   :  { %v473_v58 = vpop.xlane.xlu0 %472  ;;  %v537_v60 = vsel %vm429_vm0, %v737_v55, 0.0  ;;  %v739_v54 = vpop.eup %738 }
 0x1a7   :  { %v1074_v61 = vsub.f32 %v1007_v3, %v473_v58  ;;  %564 = vadd.xlane.f32.xlu0 %v537_v60  ;;  %v741_v63 = vpop.eup %740  ;;  %558 = vadd.xlane.f32.xlu1 %v534_v62  ;;  %750 = vpow2.f32 %v504_v56  ;;  %v527_v4 = vsel %vm429_vm0, %v739_v54, 0.0 }
 0x1a8   :  { %752 = vpow2.f32 %v522_v57  ;;  %v532_v3 = vsel %vm429_vm0, %v741_v63, 0.0 }
 0x1a9   :  { %v520_v1 = vmul.f32 1.442695, %v1074_v61  ;;  %v743_v6 = vpop.eup %742 }
 0x1aa   :  { %v477_v2 = vpop.xlane.xlu0 %476  ;;  %v745_v10 = vpop.eup %744  ;;  %v535_v11 = vsel %vm429_vm0, %v743_v6, 0.0 }
 0x1ab   :  { %v1082_v7 = vsub.f32 %v1013_v5, %v477_v2  ;;  %544 = vadd.xlane.f32.xlu0 %v527_v4  ;;  %554 = vadd.xlane.f32.xlu1 %v532_v3  ;;  %754 = vpow2.f32 %v520_v1  ;;  %v530_v17 = vsel %vm429_vm0, %v745_v10, 0.0 }
 0x1ad   :  { %v524_v0 = vmul.f32 1.442695, %v1082_v7  ;;  %v747_v12 = vpop.eup %746 }
 0x1ae   :  { %v749_v15 = vpop.eup %748  ;;  %v533_v5 = vsel %vm429_vm0, %v747_v12, 0.0 }
 0x1af   :  { %560 = vadd.xlane.f32.xlu0 %v535_v11  ;;  %550 = vadd.xlane.f32.xlu1 %v530_v17  ;;  %756 = vpow2.f32 %v524_v0  ;;  %v538_v16 = vsel %vm429_vm0, %v749_v15, 0.0 }
 0x1b1   :  { %v751_v18 = vpop.eup %750 }
 0x1b2   :  { %v753_v21 = vpop.eup %752  ;;  %v531_v22 = vsel %vm429_vm0, %v751_v18, 0.0 }
 0x1b3   :  { %556 = vadd.xlane.f32.xlu0 %v533_v5  ;;  %566 = vadd.xlane.f32.xlu1 %v538_v16  ;;  %v540_v26 = vsel %vm429_vm0, %v753_v21, 0.0 }
 0x1b5   :  { %v755_v23 = vpop.eup %754 }
 0x1b6   :  { %v539_v27 = vsel %vm429_vm0, %v755_v23, 0.0 }
 0x1b7   :  { %552 = vadd.xlane.f32.xlu0 %v531_v22  ;;  %570 = vadd.xlane.f32.xlu1 %v540_v26 }
 0x1b9   :  { %v757_v28 = vpop.eup %756 }
 0x1ba   :  { %v541_v29 = vsel %vm429_vm0, %v757_v28, 0.0 }
 0x1bb   :  { %568 = vadd.xlane.f32.xlu0 %v539_v27 }
 0x1bf   :  { %572 = vadd.xlane.f32.xlu0 %v541_v29 }
 0x228   :  { %v547_v30 = vpop.xlane.xlu1 %546 }
 0x229   :  { %758 = vlog2.f32 %v547_v30 }
 0x22c   :  { %v563_v31 = vpop.xlane.xlu1 %562 }
 0x22d   :  { %760 = vlog2.f32 %v563_v31 }
 0x230   :  { %v549_v34 = vpop.xlane.xlu0 %548  ;;  %v543_v35 = vpop.xlane.xlu1 %542 }
 0x231   :  { %762 = vlog2.f32 %v549_v34 }
 0x232   :  { %764 = vlog2.f32 %v543_v35 }
 0x233   :  { %v759_v36 = vpop.eup %758 }
 0x234   :  { %v565_v37 = vpop.xlane.xlu0 %564  ;;  %v579_v38 = vmul.f32 0.6931472, %v759_v36  ;;  %v559_v39 = vpop.xlane.xlu1 %558 }
 0x235   :  { %766 = vlog2.f32 %v565_v37 }
 0x236   :  { %768 = vlog2.f32 %v559_v39  ;;  %v608_v42 = vsub.f32 %v1020_v9, %v579_v38 }
 0x237   :  { %v761_v43 = vpop.eup %760 }
 0x238   :  { %v545_v59 = vpop.xlane.xlu0 %544  ;;  %624 = vst [vmem:[%s1171_s4 + $0x10] sm:$0xff] %v608_v42  ;;  %v595_v44 = vmul.f32 0.6931472, %v761_v43  ;;  %v555_v45 = vpop.xlane.xlu1 %554 }
 0x239   :  { %770 = vlog2.f32 %v545_v59 }
 0x23a   :  { %772 = vlog2.f32 %v555_v45  ;;  %v616_v47 = vsub.f32 %v1017_v8, %v595_v44 }
 0x23b   :  { %v763_v46 = vpop.eup %762 }
 0x23c   :  { %v765_v48 = vpop.eup %764  ;;  %v581_v49 = vmul.f32 0.6931472, %v763_v46  ;;  %v561_v52 = vpop.xlane.xlu0 %560  ;;  %632 = vst [vmem:[%s1171_s4 + $0x50] sm:$0xff] %v616_v47 }
 0x23d   :  { %v575_v9 = vmul.f32 0.6931472, %v765_v48  ;;  %v551_v53 = vpop.xlane.xlu1 %550  ;;  %774 = vlog2.f32 %v561_v52 }
 0x23e   :  { %v609_v55 = vsub.f32 %v1030_v19, %v581_v49  ;;  %776 = vlog2.f32 %v551_v53 }
 0x23f   :  { %v767_v56 = vpop.eup %766  ;;  %v606_v57 = vsub.f32 %v1024_v13, %v575_v9 }
 0x240   :  { %v769_v58 = vpop.eup %768  ;;  %625 = vst [vmem:[%s1171_s4 + $0x18] sm:$0xff] %v609_v55  ;;  %v597_v8 = vmul.f32 0.6931472, %v767_v56  ;;  %v557_v60 = vpop.xlane.xlu0 %556 }
 0x241   :  { %622 = vst [vmem:[%s1171_s4] sm:$0xff] %v606_v57  ;;  %v591_v54 = vmul.f32 0.6931472, %v769_v58  ;;  %v567_v62 = vpop.xlane.xlu1 %566  ;;  %778 = vlog2.f32 %v557_v60 }
 0x242   :  { %v617_v19 = vsub.f32 %v1036_v24, %v597_v8  ;;  %780 = vlog2.f32 %v567_v62 }
 0x243   :  { %v771_v63 = vpop.eup %770  ;;  %v614_v13 = vsub.f32 %v1027_v14, %v591_v54 }
 0x244   :  { %v773_v1 = vpop.eup %772  ;;  %633 = vst [vmem:[%s1171_s4 + $0x58] sm:$0xff] %v617_v19  ;;  %v577_v2 = vmul.f32 0.6931472, %v771_v63  ;;  %v553_v4 = vpop.xlane.xlu0 %552 }
 0x245   :  { %630 = vst [vmem:[%s1171_s4 + $0x40] sm:$0xff] %v614_v13  ;;  %v587_v6 = vmul.f32 0.6931472, %v773_v1  ;;  %v571_v3 = vpop.xlane.xlu1 %570  ;;  %782 = vlog2.f32 %v553_v4 }
 0x246   :  { %v607_v24 = vsub.f32 %v1033_v20, %v577_v2  ;;  %784 = vlog2.f32 %v571_v3 }
 0x247   :  { %v775_v10 = vpop.eup %774  ;;  %v612_v14 = vsub.f32 %v1038_v25, %v587_v6 }
 0x248   :  { %v777_v0 = vpop.eup %776  ;;  %623 = vst [vmem:[%s1171_s4 + $0x8] sm:$0xff] %v607_v24  ;;  %v593_v11 = vmul.f32 0.6931472, %v775_v10  ;;  %v569_v12 = vpop.xlane.xlu0 %568 }
 0x249   :  { %628 = vst [vmem:[%s1171_s4 + $0x30] sm:$0xff] %v612_v14  ;;  %v583_v17 = vmul.f32 0.6931472, %v777_v0  ;;  %786 = vlog2.f32 %v569_v12 }
 0x24a   :  { %v615_v15 = vsub.f32 %v1043_v32, %v593_v11 }
 0x24b   :  { %v779_v20 = vpop.eup %778  ;;  %v610_v5 = vsub.f32 %v1045_v33, %v583_v17 }
 0x24c   :  { %v781_v18 = vpop.eup %780  ;;  %631 = vst [vmem:[%s1171_s4 + $0x48] sm:$0xff] %v615_v15  ;;  %v589_v25 = vmul.f32 0.6931472, %v779_v20  ;;  %v573_v16 = vpop.xlane.xlu0 %572 }
 0x24d   :  { %626 = vst [vmem:[%s1171_s4 + $0x20] sm:$0xff] %v610_v5  ;;  %v599_v21 = vmul.f32 0.6931472, %v781_v18  ;;  %788 = vlog2.f32 %v573_v16 }
 0x24e   :  { %v613_v22 = vsub.f32 %v1053_v41, %v589_v25 }
 0x24f   :  { %v783_v23 = vpop.eup %782  ;;  %v618_v32 = vsub.f32 %v1051_v40, %v599_v21 }
 0x250   :  { %v785_v26 = vpop.eup %784  ;;  %629 = vst [vmem:[%s1171_s4 + $0x38] sm:$0xff] %v613_v22  ;;  %v585_v33 = vmul.f32 0.6931472, %v783_v23 }
 0x251   :  { %634 = vst [vmem:[%s1171_s4 + $0x60] sm:$0xff] %v618_v32  ;;  %v603_v27 = vmul.f32 0.6931472, %v785_v26 }
 0x252   :  { %v611_v28 = vsub.f32 %v1065_v51, %v585_v33 }
 0x253   :  { %v787_v29 = vpop.eup %786  ;;  %v620_v30 = vsub.f32 %v1062_v50, %v603_v27 }
 0x254   :  { %627 = vst [vmem:[%s1171_s4 + $0x28] sm:$0xff] %v611_v28  ;;  %v601_v40 = vmul.f32 0.6931472, %v787_v29 }
 0x255   :  { %636 = vst [vmem:[%s1171_s4 + $0x70] sm:$0xff] %v620_v30 }
 0x256   :  { %v619_v41 = vsub.f32 %v1074_v61, %v601_v40 }
 0x257   :  { %v789_v31 = vpop.eup %788 }
 0x258   :  { %635 = vst [vmem:[%s1171_s4 + $0x68] sm:$0xff] %v619_v41  ;;  %v605_v51 = vmul.f32 0.6931472, %v789_v31 }
 0x25a   :  { %v621_v34 = vsub.f32 %v1082_v7, %v605_v51 }
 0x25c   :  { %637 = vst [vmem:[%s1171_s4 + $0x78] sm:$0xff] %v621_v34 }

</bundles_post_ra>
